<compile_context>
chip_gen: v7x
topology: tpu7x:2x2x1
jax: 0.10.0
libtpu: 0.0.40
codegen_flags: <defaults>
</compile_context>

<pallas_src>
import functools

import jax
import jax.numpy as jnp
from jax.experimental import pallas as pl
from jax.experimental.pallas import tpu as pltpu

LANES = 128            # lane tile (last dim)
MIN_ROWS = 8           # minimum sublane rows so a block never exceeds the array
MAX_BLOCK_ROWS = 2048  # 2048 x 128 f32 = 1 MiB per input block


def _bce_partial_kernel(yh_ref, y_ref, sum_ref, cnt_ref, *, total_rows):
    """Per-block masked-BCE partial sums.

    Writes an (8, 128) partial loss-sum block and an (8, 128) partial
    count block for this grid step.  All reductions here stay on the VPU
    (sum over the sublane-block axis only); the cross-lane reduction is
    deferred to the wrapper.
    """
    i = pl.program_id(0)

    y = y_ref[...].astype(jnp.float32)
    yh = yh_ref[...].astype(jnp.float32)
    block_r = y.shape[0]

    # Row mask for the (possibly partial) last block: rows >= total_rows are
    # Pallas edge padding with undefined contents.
    row_ids = jax.lax.broadcasted_iota(jnp.int32, y.shape, 0) + i * block_r
    mask = jnp.logical_and(y > -0.5, row_ids < total_rows)

    # Replace masked-out entries with safe values so log() never produces
    # NaN that would poison the masked sum.
    yh_safe = jnp.where(mask, yh, 0.5)
    y_safe = jnp.where(mask, y, 0.5)

    # PyTorch BCELoss clamps log terms at -100.  The two logs ride the EUP
    # slot and are free at HBM-bound rates.
    log_p = jnp.maximum(jnp.log(yh_safe), -100.0)
    log_1mp = jnp.maximum(jnp.log(1.0 - yh_safe), -100.0)
    loss = -(y_safe * log_p + (1.0 - y_safe) * log_1mp)
    loss = jnp.where(mask, loss, 0.0)
    cnt = mask.astype(jnp.float32)

    # (block_r, 128) -> (8, 128): sum over the leading (sublane-block) axis.
    # Layout-preserving reshape + cross-vreg adds; no XLU cross-lane work.
    sum_ref[...] = jnp.sum(loss.reshape(block_r // 8, 8, LANES), axis=0)
    cnt_ref[...] = jnp.sum(cnt.reshape(block_r // 8, 8, LANES), axis=0)


def custom_bce_loss(y_hat, y, *, max_block_rows=MAX_BLOCK_ROWS):
    """Masked BCE loss: mean of BCE over elements where y > -0.5.

    Note: if every element is masked (count == 0) the result is NaN, matching
    the PyTorch reference (BCELoss mean over an empty selection).
    """
    yh_flat = jnp.reshape(y_hat, (-1,))
    y_flat = jnp.reshape(y, (-1,))
    n = yh_flat.shape[0]

    # Pad only the sub-row tail (and up to a MIN_ROWS floor for tiny inputs).
    # In the common case (n % 128 == 0, n >= 1024) this is a no-op and the
    # reshape below is copy-free.
    padded_rows = max(MIN_ROWS, pl.cdiv(n, LANES))
    padded_n = padded_rows * LANES
    if padded_n != n:
        pad = padded_n - n
        yh_flat = jnp.concatenate(
            [yh_flat, jnp.full((pad,), 0.5, yh_flat.dtype)])
        y_flat = jnp.concatenate(
            [y_flat, jnp.full((pad,), -1.0, y_flat.dtype)])

    rows = padded_rows
    yh2 = yh_flat.reshape(rows, LANES)
    y2 = y_flat.reshape(rows, LANES)

    # Largest multiple-of-8 block that does not exceed the array or the cap.
    block_r = max(MIN_ROWS, min(max_block_rows, (rows // 8) * 8))
    num_blocks = pl.cdiv(rows, block_r)

    kernel = functools.partial(_bce_partial_kernel, total_rows=rows)

    sum_out, cnt_out = pl.pallas_call(
        kernel,
        out_shape=(
            jax.ShapeDtypeStruct((num_blocks * 8, LANES), jnp.float32),
            jax.ShapeDtypeStruct((num_blocks * 8, LANES), jnp.float32),
        ),
        grid_spec=pltpu.PrefetchScalarGridSpec(
            num_scalar_prefetch=0,
            grid=(num_blocks,),
            in_specs=[
                pl.BlockSpec((block_r, LANES), lambda i: (i, 0)),
                pl.BlockSpec((block_r, LANES), lambda i: (i, 0)),
            ],
            out_specs=[
                pl.BlockSpec((8, LANES), lambda i: (i, 0)),
                pl.BlockSpec((8, LANES), lambda i: (i, 0)),
            ],
        ),
        compiler_params=pltpu.CompilerParams(
            # Independent per-block partials -> "parallel" (v7x megacore).
            dimension_semantics=("parallel",),
            # ~4.5 MiB needed; 32 MiB is safe on v5e/v6e and <= half of
            # v7x's 64 MiB physical VMEM.
            vmem_limit_bytes=32 * 1024 * 1024,
        ),
    )(yh2, y2)

    # Tiny final reduction + divide (one XLU-style reduce total, done by XLA).
    return jnp.sum(sum_out) / jnp.sum(cnt_out)


def _reference(y_hat, y):
    yh = jnp.reshape(y_hat, (-1,)).astype(jnp.float32)
    yy = jnp.reshape(y, (-1,)).astype(jnp.float32)
    m = yy > -0.5
    yh_s = jnp.where(m, yh, 0.5)
    yy_s = jnp.where(m, yy, 0.5)
    l = -(yy_s * jnp.maximum(jnp.log(yh_s), -100.0)
          + (1.0 - yy_s) * jnp.maximum(jnp.log(1.0 - yh_s), -100.0))
    l = jnp.where(m, l, 0.0)
    return jnp.sum(l) / jnp.sum(m.astype(jnp.float32))


if __name__ == "__main__":
    key = jax.random.PRNGKey(0)
    k1, k2, k3 = jax.random.split(key, 3)

    # Small shapes consistent with the forward (any shape; it gets flattened).
    shape = (2, 4, 16, 16)
    y_hat = jax.nn.sigmoid(jax.random.normal(k1, shape, jnp.float32))
    labels = jax.random.bernoulli(k2, 0.5, shape).astype(jnp.float32)
    # Mark ~25% of targets as "ignore" (-1), matching the y > -0.5 filter.
    ignore = jax.random.bernoulli(k3, 0.25, shape)
    y = jnp.where(ignore, -1.0, labels)

    ref = _reference(y_hat, y)

    loss = custom_bce_loss(y_hat, y)
    jax.block_until_ready(loss)
    assert jnp.allclose(loss, ref, rtol=1e-5, atol=1e-5), (loss, ref)

    # Multi-block grid path (forces several parallel grid steps).
    loss_mb = custom_bce_loss(y_hat, y, max_block_rows=8)
    jax.block_until_ready(loss_mb)
    assert jnp.allclose(loss_mb, ref, rtol=1e-5, atol=1e-5), (loss_mb, ref)

    # Non-multiple-of-128 element count + native bf16 inputs (tail-pad path,
    # in-kernel upcast path).
    k4, k5, k6 = jax.random.split(jax.random.PRNGKey(1), 3)
    shape2 = (2, 5, 101)
    y_hat2 = jax.nn.sigmoid(
        jax.random.normal(k4, shape2, jnp.float32)).astype(jnp.bfloat16)
    labels2 = jax.random.bernoulli(k5, 0.5, shape2).astype(jnp.bfloat16)
    ignore2 = jax.random.bernoulli(k6, 0.25, shape2)
    y2 = jnp.where(ignore2, jnp.bfloat16(-1.0), labels2)

    loss2 = custom_bce_loss(y_hat2, y2)
    jax.block_until_ready(loss2)
    ref2 = _reference(y_hat2, y2)
    assert jnp.allclose(loss2, ref2, rtol=1e-4, atol=1e-4), (loss2, ref2)

    print("KERNEL_OK")
</pallas_src>

<mosaic_0001>
module attributes {stable_mosaic.version = 11 : i64} {
  func.func @_bce_partial_kernel(%arg0: i32, %arg1: memref<16x128xf32, #tpu.memory_space<vmem>>, %arg2: memref<16x128xf32, #tpu.memory_space<vmem>>, %arg3: memref<8x128xf32, #tpu.memory_space<vmem>>, %arg4: memref<8x128xf32, #tpu.memory_space<vmem>>) attributes {dimension_semantics = [#tpu.dimension_semantics<parallel>], iteration_bounds = array<i64: 1>, scalar_prefetch = 0 : i64, scratch_operands = 0 : i64, tpu.core_type = #tpu.core_type<tc>, window_params = [{transform_indices = @transform_0, window_bounds = array<i64: 16, 128>}, {transform_indices = @transform_1, window_bounds = array<i64: 16, 128>}, {transform_indices = @transform_2, window_bounds = array<i64: 8, 128>}, {transform_indices = @transform_3, window_bounds = array<i64: 8, 128>}]} {
    %c0 = arith.constant 0 : index
    %c0_0 = arith.constant 0 : index
    %0 = vector.load %arg2[%c0, %c0_0] : memref<16x128xf32, #tpu.memory_space<vmem>>, vector<16x128xf32>
    %c0_1 = arith.constant 0 : index
    %c0_2 = arith.constant 0 : index
    %1 = vector.load %arg1[%c0_1, %c0_2] : memref<16x128xf32, #tpu.memory_space<vmem>>, vector<16x128xf32>
    %2 = tpu.iota {dimensions = array<i32: 0>} : vector<16x128xi32>
    %c16_i32 = arith.constant 16 : i32
    %3 = arith.muli %arg0, %c16_i32 : i32
    %4 = vector.broadcast %3 : i32 to vector<16x128xi32>
    %5 = arith.addi %2, %4 : vector<16x128xi32>
    %cst = arith.constant -5.000000e-01 : f32
    %6 = vector.broadcast %cst : f32 to vector<16x128xf32>
    %7 = arith.cmpf ogt, %0, %6 : vector<16x128xf32>
    %c16_i32_3 = arith.constant 16 : i32
    %8 = vector.broadcast %c16_i32_3 : i32 to vector<16x128xi32>
    %9 = arith.cmpi slt, %5, %8 : vector<16x128xi32>
    %10 = arith.andi %7, %9 : vector<16x128xi1>
    %cst_4 = arith.constant 5.000000e-01 : f32
    %11 = vector.broadcast %cst_4 : f32 to vector<16x128xf32>
    %12 = arith.select %10, %1, %11 : vector<16x128xi1>, vector<16x128xf32>
    %cst_5 = arith.constant 5.000000e-01 : f32
    %13 = vector.broadcast %cst_5 : f32 to vector<16x128xf32>
    %14 = arith.select %10, %0, %13 : vector<16x128xi1>, vector<16x128xf32>
    %15 = math.log %12 : vector<16x128xf32>
    %cst_6 = arith.constant -1.000000e+02 : f32
    %16 = vector.broadcast %cst_6 : f32 to vector<16x128xf32>
    %17 = arith.maximumf %15, %16 : vector<16x128xf32>
    %cst_7 = arith.constant 1.000000e+00 : f32
    %18 = vector.broadcast %cst_7 : f32 to vector<16x128xf32>
    %19 = arith.subf %18, %12 : vector<16x128xf32>
    %20 = math.log %19 : vector<16x128xf32>
    %cst_8 = arith.constant -1.000000e+02 : f32
    %21 = vector.broadcast %cst_8 : f32 to vector<16x128xf32>
    %22 = arith.maximumf %20, %21 : vector<16x128xf32>
    %23 = arith.mulf %14, %17 : vector<16x128xf32>
    %cst_9 = arith.constant 1.000000e+00 : f32
    %24 = vector.broadcast %cst_9 : f32 to vector<16x128xf32>
    %25 = arith.subf %24, %14 : vector<16x128xf32>
    %26 = arith.mulf %25, %22 : vector<16x128xf32>
    %27 = arith.addf %23, %26 : vector<16x128xf32>
    %cst_10 = arith.constant 0.000000e+00 : f32
    %28 = vector.broadcast %cst_10 : f32 to vector<16x128xf32>
    %29 = arith.subf %28, %27 : vector<16x128xf32>
    %cst_11 = arith.constant 0.000000e+00 : f32
    %30 = vector.broadcast %cst_11 : f32 to vector<16x128xf32>
    %31 = arith.select %10, %29, %30 : vector<16x128xi1>, vector<16x128xf32>
    %32 = arith.extui %10 : vector<16x128xi1> to vector<16x128xi32>
    %33 = arith.sitofp %32 : vector<16x128xi32> to vector<16x128xf32>
    %34 = vector.shape_cast %31 : vector<16x128xf32> to vector<2x8x128xf32>
    %cst_12 = arith.constant dense<0.000000e+00> : vector<8x128xf32>
    %35 = vector.multi_reduction <add>, %34, %cst_12 [0] : vector<2x8x128xf32> to vector<8x128xf32>
    %c0_13 = arith.constant 0 : index
    %c0_14 = arith.constant 0 : index
    %36 = vector.load %arg3[%c0_13, %c0_14] : memref<8x128xf32, #tpu.memory_space<vmem>>, vector<8x128xf32>
    tpu.vector_store %arg3[%c0_13, %c0_14], %35 {strides = array<i32>} : memref<8x128xf32, #tpu.memory_space<vmem>>, vector<8x128xf32>,
    %37 = vector.shape_cast %33 : vector<16x128xf32> to vector<2x8x128xf32>
    %cst_15 = arith.constant dense<0.000000e+00> : vector<8x128xf32>
    %38 = vector.multi_reduction <add>, %37, %cst_15 [0] : vector<2x8x128xf32> to vector<8x128xf32>
    %c0_16 = arith.constant 0 : index
    %c0_17 = arith.constant 0 : index
    %39 = vector.load %arg4[%c0_16, %c0_17] : memref<8x128xf32, #tpu.memory_space<vmem>>, vector<8x128xf32>
    tpu.vector_store %arg4[%c0_16, %c0_17], %38 {strides = array<i32>} : memref<8x128xf32, #tpu.memory_space<vmem>>, vector<8x128xf32>,
    return
  }
  func.func @transform_0(%arg0: i32) -> (i32, i32) {
    %c0_i32 = arith.constant 0 : i32
    %c0_i32_0 = arith.constant 0 : i32
    return %arg0, %c0_i32 : i32, i32
  }
  func.func @transform_1(%arg0: i32) -> (i32, i32) {
    %c0_i32 = arith.constant 0 : i32
    %c0_i32_0 = arith.constant 0 : i32
    return %arg0, %c0_i32 : i32, i32
  }
  func.func @transform_2(%arg0: i32) -> (i32, i32) {
    %c0_i32 = arith.constant 0 : i32
    %c0_i32_0 = arith.constant 0 : i32
    return %arg0, %c0_i32 : i32, i32
  }
  func.func @transform_3(%arg0: i32) -> (i32, i32) {
    %c0_i32 = arith.constant 0 : i32
    %c0_i32_0 = arith.constant 0 : i32
    return %arg0, %c0_i32 : i32, i32
  }
}

</mosaic_0001>

<bundles_post_ra>
// kernel: tpu_custom_call.1
= control target key start
LH: loop header
LB: loop body
LE: loop exit
PB: predicated region body
PF: predicated region fallthrough
CT: control target
= control target key end

     0   :  { %9 = vsyncpa [#allocation3], 0  ;;  %s324_s0 = inlined_call_operand.hbm [shape: f32[16,128], index: 0, kind: input, shape index: {}]   ;;  %s325_s1 = inlined_call_operand.hbm [shape: f32[16,128], index: 1, kind: input, shape index: {}]   ;;  %s326_s2 = inlined_call_operand.hbm [shape: f32[8,128], index: 2, kind: output, shape index: {0}]   ;;  %s327_s3 = inlined_call_operand.hbm [shape: f32[8,128], index: 3, kind: output, shape index: {1}]  }
   0x1   :  { %10 = vsyncpa [#allocation6], 0 }
   0x2   :  { %11 = vsyncpa [#allocation4], 0 }
   0x3   :  { %12 = vsyncpa [#allocation9], 0  ;;  %s241_s12 = smov [#allocation2]   ;;  %s145_s16 = scalar_lea.hbm %s324_s0, 256 }
   0x4   :  { %s18_s13 = sshll.u32 %s241_s12, 4  ;;  %p146_p0 = scmp.ne.s32.totalorder %s324_s0, %s145_s16  ;;  %s19_s13 = int_to_ptr.vmem [resolvable:$true] %s18_s13 }
   0x5   :  { %p149_p1 = scmp.lt.u32.totalorder %s145_s16, %s324_s0 }
   0x7   :  { %p151_p2 = pnand %p149_p1, %p146_p0 }
   0x9   :  { %154 = shalt.err (!%p151_p2)
}
   0xa   :  { %s155_s21 = scalar_lea.vmem %s19_s13, 256  ;;  %p160_p4 = scmp.lt.s32.totalorder %s19_s13, %s19_s13 }
   0xb   :  { %p156_p3 = scmp.ne.s32.totalorder %s19_s13, %s155_s21  ;;  %p161_p5 = scmp.lt.s32.totalorder %s155_s21, %s155_s21 }
   0xd   :  { %p162_p6 = por %p161_p5, %p160_p4 }
   0xf   :  { %p163_p7 = pnand %p162_p6, %p156_p3 }
  0x11   :  { %166 = shalt.err (!%p163_p7)
}
  0x12   :  { %s242_s22 = smov 128   ;;  %s243_s23 = smov 8  }
  0x13   :  { %24 = dma.hbm_to_vmem [thread:$0]  %s324_s0, 256, %s19_s13, [#allocation3], %s242_s22, %s242_s22, %s243_s23  }
  0x14   :  { %s244_s26 = smov [#allocation5]   ;;  %s167_s30 = scalar_lea.hbm %s325_s1, 256 }
  0x15   :  { %s30_s27 = sshll.u32 %s244_s26, 4  ;;  %p168_p8 = scmp.ne.s32.totalorder %s325_s1, %s167_s30  ;;  %s31_s27 = int_to_ptr.vmem [resolvable:$true] %s30_s27 }
  0x16   :  { %p171_p9 = scmp.lt.u32.totalorder %s167_s30, %s325_s1 }
  0x18   :  { %p173_p10 = pnand %p171_p9, %p168_p8 }
  0x1a   :  { %176 = shalt.err (!%p173_p10)
}
  0x1b   :  { %s177_s8 = scalar_lea.vmem %s31_s27, 256  ;;  %p182_p12 = scmp.lt.s32.totalorder %s31_s27, %s31_s27 }
  0x1c   :  { %p178_p11 = scmp.ne.s32.totalorder %s31_s27, %s177_s8  ;;  %p183_p13 = scmp.lt.s32.totalorder %s177_s8, %s177_s8 }
  0x1e   :  { %p184_p0 = por %p183_p13, %p182_p12 }
  0x20   :  { %p185_p1 = pnand %p184_p0, %p178_p11 }
  0x22   :  { %188 = shalt.err (!%p185_p1)
}
  0x23   :  { %36 = dma.hbm_to_vmem [thread:$0]  %s325_s1, 256, %s31_s27, [#allocation6], %s242_s22, %s242_s22, %s243_s23  }
  0x24   :  { %233 = dma.done.wait [#allocation3], 256  }
  0x25   :  { %234 = vsyncadd [#allocation3], 4294967040 }
  0x26   :  { %235 = dma.done.wait [#allocation6], 256  }
  0x27   :  { %236 = vsyncadd [#allocation6], 4294967040  ;;  %v43_v0 = vld [vmem:[#allocation5] sm:$0xff]  ;;  %v44_v1 = vld [vmem:[#allocation5 + $0x8] sm:$0xff]  ;;  %s245_s10 = smov [#allocation8]   ;;  %v246_v8 = vmov 0.0  }
  0x28   :  { %v45_v2 = vld [vmem:[#allocation2] sm:$0xff]  ;;  %v46_v3 = vld [vmem:[#allocation2 + $0x8] sm:$0xff]  ;;  %vm54_vm0 = vcmp.gt.f32.partialorder %v43_v0, -0.5  ;;  %vm55_vm1 = vcmp.gt.f32.partialorder %v44_v1, -0.5  ;;  %s114_s11 = sshll.u32 %s245_s10, 4  ;;  %s115_s11 = int_to_ptr.vmem [resolvable:$true] %s114_s11 }
  0x29   :  { %v60_v4 = vsel %vm54_vm0, %v45_v2, 0.5  ;;  %v61_v5 = vsel %vm55_vm1, %v46_v3, 0.5  ;;  %v128_v9 = vsel %vm54_vm0, 1.0, %v246_v8  ;;  %v129_v10 = vsel %vm55_vm1, 1.0, %v246_v8  ;;  %s189_s1 = scalar_lea.vmem %s115_s11, 128  ;;  %p194_p3 = scmp.lt.s32.totalorder %s115_s11, %s115_s11 }
  0x2a   :  { %137 = vlog2.f32 %v60_v4  ;;  %v70_v6 = vsub.f32 1.0, %v60_v4  ;;  %v71_v7 = vsub.f32 1.0, %v61_v5  ;;  %v96_v11 = vadd.f32 %v129_v10, %v128_v9  ;;  %p190_p2 = scmp.ne.s32.totalorder %s115_s11, %s189_s1  ;;  %p195_p4 = scmp.lt.s32.totalorder %s189_s1, %s189_s1 }
  0x2b   :  { %139 = vlog2.f32 %v61_v5 }
  0x2c   :  { %141 = vlog2.f32 %v70_v6  ;;  %97 = vst [vmem:[#allocation8] sm:$0xff] %v96_v11  ;;  %p196_p5 = por %p195_p4, %p194_p3 }
  0x2d   :  { %143 = vlog2.f32 %v71_v7 }
  0x2e   :  { %p197_p6 = pnand %p196_p5, %p190_p2 }
  0x30   :  { %200 = shalt.err (!%p197_p6)
}
  0x31   :  { %s201_s14 = scalar_lea.hbm %s327_s3, 128 }
  0x32   :  { %p202_p7 = scmp.ne.s32.totalorder %s327_s3, %s201_s14  ;;  %p205_p8 = scmp.lt.u32.totalorder %s201_s14, %s327_s3 }
  0x34   :  { %p207_p9 = pnand %p205_p8, %p202_p7 }
  0x36   :  { %210 = shalt.err (!%p207_p9)
}
  0x37   :  { %117 = dma.vmem_to_hbm [thread:$0]  %s115_s11, 128, %s327_s3, [#allocation9]   ;;  %v138_v12 = vpop.eup %137  ;;  %v62_v13 = vsel %vm54_vm0, %v43_v0, 0.5  ;;  %v63_v15 = vsel %vm55_vm1, %v44_v1, 0.5 }
  0x38   :  { %v140_v14 = vpop.eup %139  ;;  %v65_v16 = vmul.f32 0.6931472, %v138_v12  ;;  %v80_v22 = vsub.f32 1.0, %v62_v13  ;;  %v81_v25 = vsub.f32 1.0, %v63_v15  ;;  %s247_s3 = smov [#allocation7]  }
  0x39   :  { %v142_v17 = vpop.eup %141  ;;  %v67_v18 = vmul.f32 0.6931472, %v140_v14  ;;  %s104_s21 = sshll.u32 %s247_s3, 4  ;;  %s105_s21 = int_to_ptr.vmem [resolvable:$true] %s104_s21 }
  0x3a   :  { %v144_v19 = vpop.eup %143  ;;  %v68_v20 = vmax.f32 %v65_v16, -100.0  ;;  %v73_v21 = vmul.f32 0.6931472, %v142_v17  ;;  %s211_s22 = scalar_lea.vmem %s105_s21, 128  ;;  %p216_p11 = scmp.lt.s32.totalorder %s105_s21, %s105_s21 }
  0x3b   :  { %v69_v23 = vmax.f32 %v67_v18, -100.0  ;;  %v75_v24 = vmul.f32 0.6931472, %v144_v19  ;;  %p212_p10 = scmp.ne.s32.totalorder %s105_s21, %s211_s22  ;;  %p217_p12 = scmp.lt.s32.totalorder %s211_s22, %s211_s22 }
  0x3c   :  { %v76_v26 = vmax.f32 %v73_v21, -100.0  ;;  %v78_v27 = vmul.f32 %v68_v20, %v62_v13 }
  0x3d   :  { %v77_v28 = vmax.f32 %v75_v24, -100.0  ;;  %v79_v29 = vmul.f32 %v69_v23, %v63_v15  ;;  %p218_p13 = por %p217_p12, %p216_p11 }
  0x3e   :  { %v82_v30 = vmul.f32 %v80_v22, %v76_v26 }
  0x3f   :  { %v83_v31 = vmul.f32 %v81_v25, %v77_v28  ;;  %p219_p0 = pnand %p218_p13, %p212_p10 }
  0x40   :  { %v84_v32 = vadd.f32 %v82_v30, %v78_v27 }
  0x41   :  { %v85_v33 = vadd.f32 %v83_v31, %v79_v29 }
  0x42   :  { %v86_v34 = vsub.f32 0.0, %v84_v32 }
  0x43   :  { %v87_v35 = vsub.f32 0.0, %v85_v33 }
  0x44   :  { %v88_v36 = vsel %vm54_vm0, %v86_v34, 0.0 }
  0x45   :  { %v89_v37 = vsel %vm55_vm1, %v87_v35, 0.0 }
  0x46   :  { %v94_v38 = vadd.f32 %v89_v37, %v88_v36 }
  0x48   :  { %95 = vst [vmem:[#allocation7] sm:$0xff] %v94_v38 }
  0x49   :  { %222 = shalt.err (!%p219_p0)
}
  0x4a   :  { %s223_s25 = scalar_lea.hbm %s326_s2, 128 }
  0x4b   :  { %p224_p1 = scmp.ne.s32.totalorder %s326_s2, %s223_s25  ;;  %p227_p2 = scmp.lt.u32.totalorder %s223_s25, %s326_s2 }
  0x4d   :  { %p229_p3 = pnand %p227_p2, %p224_p1 }
  0x4f   :  { %232 = shalt.err (!%p229_p3)
}
  0x50   :  { %107 = dma.vmem_to_hbm [thread:$0]  %s105_s21, 128, %s326_s2, [#allocation4]  }
  0x51   :  { %237 = dma.done.wait [#allocation4], 128  }
  0x52   :  { %238 = vsyncadd [#allocation4], 4294967168 }
  0x53   :  { %239 = dma.done.wait [#allocation9], 128  }
  0x54   :  { %240 = vsyncadd [#allocation9], 4294967168 }
  0x55   :  { %124 = vsyncpa [#allocation3], 1 }
  0x56   :  { %125 = vsyncpa [#allocation6], 1 }
  0x57   :  { %126 = vsyncpa [#allocation4], 1 }
  0x58   :  { %127 = vsyncpa [#allocation9], 1 }

</bundles_post_ra>
